<compile_context>
chip_gen: v6e
topology: v6e:2x2x1
jax: 0.10.0
libtpu: 0.0.40
codegen_flags: <defaults>
</compile_context>

<pallas_src>
import jax
import jax.numpy as jnp
from jax.experimental import pallas as pl
from jax.experimental.pallas import tpu as pltpu

LN_EPS = 1e-5   # PyTorch nn.LayerNorm default
SUBLANE = 8


def _round_up(x, m):
    return (x + m - 1) // m * m


def _layernorm(x, gamma, beta):
    # E[x^2] - mu^2 form: the two lane reductions are independent, so they can
    # issue concurrently on the XLUs instead of serializing (center -> square).
    mu = jnp.mean(x, axis=-1, keepdims=True)
    ms = jnp.mean(x * x, axis=-1, keepdims=True)
    var = jnp.maximum(ms - mu * mu, 0.0)          # guard tiny f32 cancellation
    return (x - mu) * (jax.lax.rsqrt(var + LN_EPS) * gamma) + beta


def fallback_kernel(x_ref, w1_ref, w2_ref, w3_ref, vec_ref, out_ref):
    H = w1_ref.shape[1]           # hidden_dim
    H2 = w2_ref.shape[1]          # hidden_dim // 2
    C = w3_ref.shape[1]           # num_classes (unpadded)

    # Packed vector slab: one DMA, static row/lane slices.  All f32.
    bc = vec_ref[0:1, :H]         # fused bias of (input projections + fusion L1)
    g1 = vec_ref[1:2, :H]
    be1 = vec_ref[2:3, :H]
    b2 = vec_ref[3:4, :H2]
    g2 = vec_ref[4:5, :H2]
    be2 = vec_ref[5:6, :H2]
    b3 = vec_ref[6:7, :C]

    # Layer 1 (bf16 MXU, f32 accumulate):  cat(xs, xg) @ [Ws@W1_s ; Wg@W1_g]
    h1 = jnp.dot(x_ref[...], w1_ref[...],
                 preferred_element_type=jnp.float32) + bc
    h1 = jnp.maximum(_layernorm(h1, g1, be1), 0.0)       # LN -> ReLU (dropout = id)

    h2 = jnp.dot(h1.astype(w2_ref.dtype), w2_ref[...],
                 preferred_element_type=jnp.float32) + b2
    h2 = jnp.maximum(_layernorm(h2, g2, be2), 0.0)       # LN -> ReLU (dropout = id)

    # Final linear straight into the unpadded (TB, C) output block.
    out_ref[...] = (jnp.dot(h2.astype(w3_ref.dtype), w3_ref[...],
                            preferred_element_type=jnp.float32)
                    + b3).astype(out_ref.dtype)


def prepare_params(params, d_model_spectra):
    """One-time (wrapper-side) algebraic fusion + packing of the parameters."""
    hi = jax.lax.Precision.HIGHEST
    f32 = jnp.float32
    ws, bs = params["ws"].astype(f32), params["bs"].astype(f32)
    wg, bg = params["wg"].astype(f32), params["bg"].astype(f32)
    w1, b1 = params["w1"].astype(f32), params["b1"].astype(f32)
    w2, b2 = params["w2"].astype(f32), params["b2"].astype(f32)
    w3, b3 = params["w3"].astype(f32), params["b3"].astype(f32)
    g1, be1 = params["g1"].astype(f32), params["be1"].astype(f32)
    g2, be2 = params["g2"].astype(f32), params["be2"].astype(f32)

    ds = d_model_spectra
    H = w1.shape[1]
    H2 = w2.shape[1]
    C = w3.shape[1]

    # Fold the two input projections into fusion layer 1 (no nonlinearity in
    # between):  cat(xs@Ws+bs, xg@Wg+bg) @ W1 + b1
    #         == cat(xs, xg) @ [Ws@W1_s ; Wg@W1_g] + (bs@W1_s + bg@W1_g + b1)
    w1_s, w1_g = w1[:ds, :], w1[ds:, :]
    wcs = jnp.dot(ws, w1_s, precision=hi)                # (in_spectra, H)
    wcg = jnp.dot(wg, w1_g, precision=hi)                # (in_gaia,    H)
    bc = jnp.dot(bs, w1_s, precision=hi) + jnp.dot(bg, w1_g, precision=hi) + b1
    w1c = jnp.concatenate([wcs, wcg], axis=0)            # pairs with cat(xs, xg)

    Wv = max(H, H2, C)
    vec = jnp.zeros((SUBLANE, Wv), f32)
    vec = vec.at[0, :H].set(bc[0])
    vec = vec.at[1, :H].set(g1[0])
    vec = vec.at[2, :H].set(be1[0])
    vec = vec.at[3, :H2].set(b2[0])
    vec = vec.at[4, :H2].set(g2[0])
    vec = vec.at[5, :H2].set(be2[0])
    vec = vec.at[6, :C].set(b3[0])

    # bf16 at the HBM/MXU boundary (f32 accumulation happens in the kernel).
    return {"w1c": w1c.astype(jnp.bfloat16),
            "w2": w2.astype(jnp.bfloat16),
            "w3": w3.astype(jnp.bfloat16),
            "vec": vec}


def _choose_tiling(batch, row_bytes):
    """Pick (TB, B_pad): batch tile (multiple of 8) and padded batch size.

    Prefers the largest tile that (a) keeps the per-step working set well
    inside the requested scoped-VMEM budget, (b) divides the 8-aligned batch
    exactly (avoids a full pad-copy of the input), and (c) leaves >= 2 grid
    steps so v7x's two TensorCores can split the "parallel" batch axis.
    """
    b8 = _round_up(max(batch, 1), SUBLANE)
    max_tb = min(2048, (8 << 20) // max(row_bytes, 1))
    max_tb = max(SUBLANE, max_tb // SUBLANE * SUBLANE)
    if b8 <= 2 * SUBLANE:                 # too small to split across cores
        return b8, b8
    best = 0
    t = SUBLANE
    while t <= min(max_tb, b8 // 2):      # exact divisors only -> no pad-copy
        if b8 % t == 0:
            best = t
        t += SUBLANE
    if best >= 128 or (best > 0 and b8 <= 2048):
        return best, b8
    # No good exact divisor: accept a pad-copy up to the next tile multiple.
    tb = min(max_tb, _round_up((b8 + 1) // 2, SUBLANE))
    return tb, _round_up(b8, tb)


def mamba_classifier_fallback(x_spectra, x_gaia, prepped):
    B = x_spectra.shape[0]
    w1c, w2, w3, vec = prepped["w1c"], prepped["w2"], prepped["w3"], prepped["vec"]
    D = w1c.shape[0]                      # input_dim_spectra + input_dim_gaia
    H, H2, C = w1c.shape[1], w2.shape[1], w3.shape[1]

    # Single bf16 input stream: last-dim concat fuses with the bf16 cast in XLA.
    x = jnp.concatenate([x_spectra, x_gaia], axis=-1).astype(jnp.bfloat16)

    # Bytes per batch row held live per grid step: double-buffered bf16 input,
    # f32 LN/ReLU intermediates, double-buffered f32 output.
    row_bytes = 4 * D + 4 * (H + H2) + 8 * C
    TB, B_pad = _choose_tiling(B, row_bytes)
    if B_pad != B:
        x = jnp.pad(x, ((0, B_pad - B), (0, 0)))
    nb = B_pad // TB

    flops = 2 * B_pad * (D * H + H * H2 + H2 * C)
    bytes_accessed = (2 * (B_pad * D + D * H + H * H2 + H2 * C)   # bf16
                      + 4 * (B_pad * C + vec.size))               # f32
    cost = pl.CostEstimate(flops=flops, transcendentals=2 * B_pad,
                           bytes_accessed=bytes_accessed)

    def resident(a):                       # constant block index -> stays in VMEM
        return pl.BlockSpec(a.shape, lambda i: (0, 0))

    out = pl.pallas_call(
        fallback_kernel,
        out_shape=jax.ShapeDtypeStruct((B_pad, C), jnp.float32),
        grid_spec=pltpu.PrefetchScalarGridSpec(
            num_scalar_prefetch=0,
            grid=(nb,),
            in_specs=[
                pl.BlockSpec((TB, D), lambda i: (i, 0)),
                resident(w1c), resident(w2), resident(w3), resident(vec),
            ],
            out_specs=pl.BlockSpec((TB, C), lambda i: (i, 0)),
        ),
        compiler_params=pltpu.CompilerParams(
            dimension_semantics=("parallel",),        # v7x: split batch over 2 TCs
            vmem_limit_bytes=32 * 1024 * 1024),       # raise v5e's 16 MiB default
        cost_estimate=cost,
    )(x, w1c, w2, w3, vec)

    return out[:B]


def init_params(key, input_dim_spectra, input_dim_gaia,
                d_model_spectra, d_model_gaia, hidden_dim, num_classes):
    """Deterministic synthetic initialization (uniform, PyTorch-like scaling)."""
    def linear(k, fan_in, fan_out):
        k1, k2 = jax.random.split(k)
        bound = 1.0 / jnp.sqrt(fan_in)
        w = jax.random.uniform(k1, (fan_in, fan_out), jnp.float32, -bound, bound)
        b = jax.random.uniform(k2, (1, fan_out), jnp.float32, -bound, bound)
        return w, b

    fusion_dim = d_model_spectra + d_model_gaia
    h2 = hidden_dim // 2
    keys = jax.random.split(key, 5)
    ws, bs = linear(keys[0], input_dim_spectra, d_model_spectra)
    wg, bg = linear(keys[1], input_dim_gaia, d_model_gaia)
    w1, b1 = linear(keys[2], fusion_dim, hidden_dim)
    w2, b2 = linear(keys[3], hidden_dim, h2)
    w3, b3 = linear(keys[4], h2, num_classes)
    return {
        "ws": ws, "bs": bs, "wg": wg, "bg": bg,
        "w1": w1, "b1": b1,
        "g1": jnp.ones((1, hidden_dim), jnp.float32),
        "be1": jnp.zeros((1, hidden_dim), jnp.float32),
        "w2": w2, "b2": b2,
        "g2": jnp.ones((1, h2), jnp.float32),
        "be2": jnp.zeros((1, h2), jnp.float32),
        "w3": w3, "b3": b3,
    }


if __name__ == "__main__":
    # Small, forward-consistent shapes.
    B = 8
    input_dim_spectra, input_dim_gaia = 24, 8
    d_model_spectra, d_model_gaia = 32, 16
    hidden_dim, num_classes = 64, 4

    key = jax.random.PRNGKey(0)
    k_xs, k_xg, k_p = jax.random.split(key, 3)
    x_spectra = jax.random.normal(k_xs, (B, input_dim_spectra), jnp.float32)
    x_gaia = jax.random.normal(k_xg, (B, input_dim_gaia), jnp.float32)
    params = init_params(k_p, input_dim_spectra, input_dim_gaia,
                         d_model_spectra, d_model_gaia, hidden_dim, num_classes)

    prepped = prepare_params(params, d_model_spectra)
    logits = mamba_classifier_fallback(x_spectra, x_gaia, prepped)
    jax.block_until_ready(logits)

    # --- Reference 1: mimic the kernel's bf16-operand / f32-accumulate math. ---
    def ref_quantized(xs, xg, p):
        hi = jax.lax.Precision.HIGHEST
        f32 = jnp.float32
        x = jnp.concatenate([xs, xg], -1).astype(jnp.bfloat16).astype(f32)
        w1c, w2, w3 = (p["w1c"].astype(f32), p["w2"].astype(f32), p["w3"].astype(f32))
        vec = p["vec"]
        H, H2, C = w1c.shape[1], w2.shape[1], w3.shape[1]
        bc, g1, be1 = vec[0, :H], vec[1, :H], vec[2, :H]
        b2, g2, be2 = vec[3, :H2], vec[4, :H2], vec[5, :H2]
        b3 = vec[6, :C]

        def ln(v, g, b):
            mu = v.mean(-1, keepdims=True)
            var = jnp.maximum((v * v).mean(-1, keepdims=True) - mu * mu, 0.0)
            return (v - mu) * jax.lax.rsqrt(var + LN_EPS) * g + b

        h1 = jnp.maximum(ln(jnp.dot(x, w1c, precision=hi) + bc, g1, be1), 0.0)
        h1 = h1.astype(jnp.bfloat16).astype(f32)
        h2 = jnp.maximum(ln(jnp.dot(h1, w2, precision=hi) + b2, g2, be2), 0.0)
        h2 = h2.astype(jnp.bfloat16).astype(f32)
        return jnp.dot(h2, w3, precision=hi) + b3

    # --- Reference 2: the ORIGINAL (unfused, full-f32) formulation. ---
    def ref_original(xs, xg, p):
        hs = xs @ p["ws"] + p["bs"]
        hg = xg @ p["wg"] + p["bg"]
        f = jnp.concatenate([hs, hg], axis=-1)

        def ln(v, g, b):
            mu = v.mean(-1, keepdims=True)
            var = ((v - mu) ** 2).mean(-1, keepdims=True)
            return (v - mu) * jax.lax.rsqrt(var + LN_EPS) * g + b

        h1 = jnp.maximum(ln(f @ p["w1"] + p["b1"], p["g1"], p["be1"]), 0.0)
        h2 = jnp.maximum(ln(h1 @ p["w2"] + p["b2"], p["g2"], p["be2"]), 0.0)
        return h2 @ p["w3"] + p["b3"]

    exp_q = ref_quantized(x_spectra, x_gaia, prepped)
    exp_f = ref_original(x_spectra, x_gaia, params)

    # Tight check vs the quantization-matched reference (only MXU accumulation
    # order differs); loose check vs the full-f32 original (bf16 operands and
    # the algebraic weight fusion reorder/round the accumulation).
    assert logits.shape == (B, num_classes)
    assert jnp.allclose(logits, exp_q, atol=1e-3, rtol=1e-3), "mismatch vs quantized ref"
    assert jnp.allclose(logits, exp_f, atol=3e-2, rtol=3e-2), "mismatch vs f32 ref"
    # TODO(synk): training-mode Dropout (stochastic masking) not implemented; inference only.
    print("KERNEL_OK")
</pallas_src>

<mosaic_0001>
module attributes {stable_mosaic.version = 11 : i64} {
  func.func @fallback_kernel(%arg0: i32, %arg1: memref<8x32xbf16, #tpu.memory_space<vmem>>, %arg2: memref<32x64xbf16, #tpu.memory_space<vmem>>, %arg3: memref<64x32xbf16, #tpu.memory_space<vmem>>, %arg4: memref<32x4xbf16, #tpu.memory_space<vmem>>, %arg5: memref<8x64xf32, #tpu.memory_space<vmem>>, %arg6: memref<8x4xf32, #tpu.memory_space<vmem>>) attributes {dimension_semantics = [#tpu.dimension_semantics<parallel>], iteration_bounds = array<i64: 1>, scalar_prefetch = 0 : i64, scratch_operands = 0 : i64, tpu.core_type = #tpu.core_type<tc>, window_params = [{transform_indices = @transform_0, window_bounds = array<i64: 8, 32>}, {pipeline_mode = #tpu.pipeline_mode<synchronous>, transform_indices = @transform_1, window_bounds = array<i64: 32, 64>}, {pipeline_mode = #tpu.pipeline_mode<synchronous>, transform_indices = @transform_2, window_bounds = array<i64: 64, 32>}, {pipeline_mode = #tpu.pipeline_mode<synchronous>, transform_indices = @transform_3, window_bounds = array<i64: 32, 4>}, {pipeline_mode = #tpu.pipeline_mode<synchronous>, transform_indices = @transform_4, window_bounds = array<i64: 8, 64>}, {transform_indices = @transform_5, window_bounds = array<i64: 8, 4>}]} {
    %c0 = arith.constant 0 : index
    %c0_0 = arith.constant 0 : index
    %0 = vector.load %arg5[%c0, %c0_0] : memref<8x64xf32, #tpu.memory_space<vmem>>, vector<1x64xf32>
    %c1 = arith.constant 1 : index
    %c0_1 = arith.constant 0 : index
    %1 = vector.load %arg5[%c1, %c0_1] : memref<8x64xf32, #tpu.memory_space<vmem>>, vector<1x64xf32>
    %c2 = arith.constant 2 : index
    %c0_2 = arith.constant 0 : index
    %2 = vector.load %arg5[%c2, %c0_2] : memref<8x64xf32, #tpu.memory_space<vmem>>, vector<1x64xf32>
    %c3 = arith.constant 3 : index
    %c0_3 = arith.constant 0 : index
    %3 = vector.load %arg5[%c3, %c0_3] : memref<8x64xf32, #tpu.memory_space<vmem>>, vector<1x32xf32>
    %c4 = arith.constant 4 : index
    %c0_4 = arith.constant 0 : index
    %4 = vector.load %arg5[%c4, %c0_4] : memref<8x64xf32, #tpu.memory_space<vmem>>, vector<1x32xf32>
    %c5 = arith.constant 5 : index
    %c0_5 = arith.constant 0 : index
    %5 = vector.load %arg5[%c5, %c0_5] : memref<8x64xf32, #tpu.memory_space<vmem>>, vector<1x32xf32>
    %c6 = arith.constant 6 : index
    %c0_6 = arith.constant 0 : index
    %6 = vector.load %arg5[%c6, %c0_6] : memref<8x64xf32, #tpu.memory_space<vmem>>, vector<1x4xf32>
    %c0_7 = arith.constant 0 : index
    %c0_8 = arith.constant 0 : index
    %7 = vector.load %arg1[%c0_7, %c0_8] : memref<8x32xbf16, #tpu.memory_space<vmem>>, vector<8x32xbf16>
    %c0_9 = arith.constant 0 : index
    %c0_10 = arith.constant 0 : index
    %8 = vector.load %arg2[%c0_9, %c0_10] : memref<32x64xbf16, #tpu.memory_space<vmem>>, vector<32x64xbf16>
    %cst = arith.constant dense<0.000000e+00> : vector<8x64xf32>
    %9 = tpu.matmul %7, %8, %cst {dimension_numbers = #tpu.dot_dimension_numbers<[1], [0], [0], [1], [0, 0, 1, 1], [], []>} : vector<8x32xbf16>, vector<32x64xbf16>, vector<8x64xf32> -> vector<8x64xf32>
    %10 = vector.broadcast %0 : vector<1x64xf32> to vector<8x64xf32>
    %11 = arith.addf %9, %10 : vector<8x64xf32>
    %cst_11 = arith.constant dense<0.000000e+00> : vector<8xf32>
    %12 = vector.multi_reduction <add>, %11, %cst_11 [1] : vector<8x64xf32> to vector<8xf32>
    %13 = vector.shape_cast %12 : vector<8xf32> to vector<8x1xf32>
    %cst_12 = arith.constant 6.400000e+01 : f32
    %14 = vector.broadcast %cst_12 : f32 to vector<8x1xf32>
    %15 = arith.divf %13, %14 : vector<8x1xf32>
    %16 = arith.mulf %11, %11 : vector<8x64xf32>
    %cst_13 = arith.constant dense<0.000000e+00> : vector<8xf32>
    %17 = vector.multi_reduction <add>, %16, %cst_13 [1] : vector<8x64xf32> to vector<8xf32>
    %18 = vector.shape_cast %17 : vector<8xf32> to vector<8x1xf32>
    %cst_14 = arith.constant 6.400000e+01 : f32
    %19 = vector.broadcast %cst_14 : f32 to vector<8x1xf32>
    %20 = arith.divf %18, %19 : vector<8x1xf32>
    %21 = arith.mulf %15, %15 : vector<8x1xf32>
    %22 = arith.subf %20, %21 : vector<8x1xf32>
    %cst_15 = arith.constant 0.000000e+00 : f32
    %23 = vector.broadcast %cst_15 : f32 to vector<8x1xf32>
    %24 = arith.maximumf %22, %23 : vector<8x1xf32>
    %25 = vector.broadcast %15 : vector<8x1xf32> to vector<8x64xf32>
    %26 = arith.subf %11, %25 : vector<8x64xf32>
    %cst_16 = arith.constant 9.99999974E-6 : f32
    %27 = vector.broadcast %cst_16 : f32 to vector<8x1xf32>
    %28 = arith.addf %24, %27 : vector<8x1xf32>
    %29 = math.rsqrt %28 : vector<8x1xf32>
    %30 = vector.broadcast %29 : vector<8x1xf32> to vector<8x64xf32>
    %31 = vector.broadcast %1 : vector<1x64xf32> to vector<8x64xf32>
    %32 = arith.mulf %30, %31 : vector<8x64xf32>
    %33 = arith.mulf %26, %32 : vector<8x64xf32>
    %34 = vector.broadcast %2 : vector<1x64xf32> to vector<8x64xf32>
    %35 = arith.addf %33, %34 : vector<8x64xf32>
    %cst_17 = arith.constant 0.000000e+00 : f32
    %36 = vector.broadcast %cst_17 : f32 to vector<8x64xf32>
    %37 = arith.maximumf %35, %36 : vector<8x64xf32>
    %38 = arith.truncf %37 : vector<8x64xf32> to vector<8x64xbf16>
    %c0_18 = arith.constant 0 : index
    %c0_19 = arith.constant 0 : index
    %39 = vector.load %arg3[%c0_18, %c0_19] : memref<64x32xbf16, #tpu.memory_space<vmem>>, vector<64x32xbf16>
    %cst_20 = arith.constant dense<0.000000e+00> : vector<8x32xf32>
    %40 = tpu.matmul %38, %39, %cst_20 {dimension_numbers = #tpu.dot_dimension_numbers<[1], [0], [0], [1], [0, 0, 1, 1], [], []>} : vector<8x64xbf16>, vector<64x32xbf16>, vector<8x32xf32> -> vector<8x32xf32>
    %41 = vector.broadcast %3 : vector<1x32xf32> to vector<8x32xf32>
    %42 = arith.addf %40, %41 : vector<8x32xf32>
    %cst_21 = arith.constant dense<0.000000e+00> : vector<8xf32>
    %43 = vector.multi_reduction <add>, %42, %cst_21 [1] : vector<8x32xf32> to vector<8xf32>
    %44 = vector.shape_cast %43 : vector<8xf32> to vector<8x1xf32>
    %cst_22 = arith.constant 3.200000e+01 : f32
    %45 = vector.broadcast %cst_22 : f32 to vector<8x1xf32>
    %46 = arith.divf %44, %45 : vector<8x1xf32>
    %47 = arith.mulf %42, %42 : vector<8x32xf32>
    %cst_23 = arith.constant dense<0.000000e+00> : vector<8xf32>
    %48 = vector.multi_reduction <add>, %47, %cst_23 [1] : vector<8x32xf32> to vector<8xf32>
    %49 = vector.shape_cast %48 : vector<8xf32> to vector<8x1xf32>
    %cst_24 = arith.constant 3.200000e+01 : f32
    %50 = vector.broadcast %cst_24 : f32 to vector<8x1xf32>
    %51 = arith.divf %49, %50 : vector<8x1xf32>
    %52 = arith.mulf %46, %46 : vector<8x1xf32>
    %53 = arith.subf %51, %52 : vector<8x1xf32>
    %cst_25 = arith.constant 0.000000e+00 : f32
    %54 = vector.broadcast %cst_25 : f32 to vector<8x1xf32>
    %55 = arith.maximumf %53, %54 : vector<8x1xf32>
    %56 = vector.broadcast %46 : vector<8x1xf32> to vector<8x32xf32>
    %57 = arith.subf %42, %56 : vector<8x32xf32>
    %cst_26 = arith.constant 9.99999974E-6 : f32
    %58 = vector.broadcast %cst_26 : f32 to vector<8x1xf32>
    %59 = arith.addf %55, %58 : vector<8x1xf32>
    %60 = math.rsqrt %59 : vector<8x1xf32>
    %61 = vector.broadcast %60 : vector<8x1xf32> to vector<8x32xf32>
    %62 = vector.broadcast %4 : vector<1x32xf32> to vector<8x32xf32>
    %63 = arith.mulf %61, %62 : vector<8x32xf32>
    %64 = arith.mulf %57, %63 : vector<8x32xf32>
    %65 = vector.broadcast %5 : vector<1x32xf32> to vector<8x32xf32>
    %66 = arith.addf %64, %65 : vector<8x32xf32>
    %cst_27 = arith.constant 0.000000e+00 : f32
    %67 = vector.broadcast %cst_27 : f32 to vector<8x32xf32>
    %68 = arith.maximumf %66, %67 : vector<8x32xf32>
    %69 = arith.truncf %68 : vector<8x32xf32> to vector<8x32xbf16>
    %c0_28 = arith.constant 0 : index
    %c0_29 = arith.constant 0 : index
    %70 = vector.load %arg4[%c0_28, %c0_29] : memref<32x4xbf16, #tpu.memory_space<vmem>>, vector<32x4xbf16>
    %cst_30 = arith.constant dense<0.000000e+00> : vector<8x4xf32>
    %71 = tpu.matmul %69, %70, %cst_30 {dimension_numbers = #tpu.dot_dimension_numbers<[1], [0], [0], [1], [0, 0, 1, 1], [], []>} : vector<8x32xbf16>, vector<32x4xbf16>, vector<8x4xf32> -> vector<8x4xf32>
    %72 = vector.broadcast %6 : vector<1x4xf32> to vector<8x4xf32>
    %73 = arith.addf %71, %72 : vector<8x4xf32>
    %c0_31 = arith.constant 0 : index
    %c0_32 = arith.constant 0 : index
    %74 = vector.load %arg6[%c0_31, %c0_32] : memref<8x4xf32, #tpu.memory_space<vmem>>, vector<8x4xf32>
    tpu.vector_store %arg6[%c0_31, %c0_32], %73 {strides = array<i32>} : memref<8x4xf32, #tpu.memory_space<vmem>>, vector<8x4xf32>,
    return
  }
  func.func @transform_0(%arg0: i32) -> (i32, i32) {
    %c0_i32 = arith.constant 0 : i32
    %c0_i32_0 = arith.constant 0 : i32
    return %arg0, %c0_i32 : i32, i32
  }
  func.func @transform_1(%arg0: i32) -> (i32, i32) {
    %c0_i32 = arith.constant 0 : i32
    %c0_i32_0 = arith.constant 0 : i32
    %c0_i32_1 = arith.constant 0 : i32
    return %c0_i32, %c0_i32_0 : i32, i32
  }
  func.func @transform_2(%arg0: i32) -> (i32, i32) {
    %c0_i32 = arith.constant 0 : i32
    %c0_i32_0 = arith.constant 0 : i32
    %c0_i32_1 = arith.constant 0 : i32
    return %c0_i32, %c0_i32_0 : i32, i32
  }
  func.func @transform_3(%arg0: i32) -> (i32, i32) {
    %c0_i32 = arith.constant 0 : i32
    %c0_i32_0 = arith.constant 0 : i32
    %c0_i32_1 = arith.constant 0 : i32
    return %c0_i32, %c0_i32_0 : i32, i32
  }
  func.func @transform_4(%arg0: i32) -> (i32, i32) {
    %c0_i32 = arith.constant 0 : i32
    %c0_i32_0 = arith.constant 0 : i32
    %c0_i32_1 = arith.constant 0 : i32
    return %c0_i32, %c0_i32_0 : i32, i32
  }
  func.func @transform_5(%arg0: i32) -> (i32, i32) {
    %c0_i32 = arith.constant 0 : i32
    %c0_i32_0 = arith.constant 0 : i32
    return %arg0, %c0_i32 : i32, i32
  }
}

</mosaic_0001>

<bundles_post_ra>
// kernel: tpu_custom_call.1
= control target key start
LH: loop header
LB: loop body
LE: loop exit
PB: predicated region body
PF: predicated region fallthrough
CT: control target
= control target key end

     0   :  { %v371_v0 = vmov 0.0   ;;  %vm372_vm0 = vmmov 0   ;;  %vm49_vm1 = vcmask 261120   ;;  %vm93_vm2 = vcmask 523264   ;;  %s472_s1 = inlined_call_operand.vmem [shape: bf16[32,64], index: 1, kind: input, shape index: {}]   ;;  %s473_s0 = inlined_call_operand.vmem [shape: bf16[8,32], index: 0, kind: input, shape index: {}]   ;;  %s474_s4 = inlined_call_operand.vmem [shape: f32[8,64], index: 4, kind: input, shape index: {}]   ;;  %s475_s2 = inlined_call_operand.vmem [shape: bf16[64,32], index: 2, kind: input, shape index: {}]   ;;  %s476_s3 = inlined_call_operand.vmem [shape: bf16[32,4], index: 3, kind: input, shape index: {}]   ;;  %s477_s5 = inlined_call_operand.vmem [shape: f32[8,4], index: 5, kind: output, shape index: {}]  }
   0x1   :  { %329 = vmatprep.subr.bf16.mxu0 %v371_v0  ;;  %v359_v1 = vld [vmem:[%s472_s1 + $0x8] sm:$0xff]   ;;  %333 = vmatprep.mubr.msk.bf16.mxu0 %vm372_vm0, %v371_v0  ;;  %v360_v2 = vld [vmem:[%s472_s1] sm:$0xff]   ;;  %v361_v13 = vld [vmem:[%s475_s2 + $0x18] sm:$0xff]   ;;  %vm294_vm3 = vcmask 31744  }
   0x2   :  { %337 = vmatprep.subr.bf16.mxu1 %v371_v0  ;;  %345 = vmatprep.mubr.msk.bf16.mxu1 %vm372_vm0, %v371_v0  ;;  %v28_v3 = vld [vmem:[%s473_s0] sm:$0xf]  ;;  %v362_v14 = vld [vmem:[%s475_s2 + $0x10] sm:$0xff]   ;;  %v363_v15 = vld [vmem:[%s475_s2 + $0x8] sm:$0xff]  }
   0x3   :  { %330 = vmatpush3.bf16.msra.mxu0 %v359_v1  ;;  %v300_v4 = vld [vmem:[%s474_s4] ss:$0 sm:$0xff]  ;;  %338 = vmatpush3.bf16.msra.mxu1 %v361_v13  ;;  %v304_v25 = vld [vmem:[%s474_s4 + $0x1] ss:$0 sm:$0xff]  ;;  %v305_v29 = vld [vmem:[%s474_s4 + $0x2] ss:$0 sm:$0xff] }
   0x4   :  { %331 = vmatprep.subr.bf16.mxu0 %v371_v0  ;;  %339 = vmatprep.subr.bf16.mxu1 %v371_v0  ;;  %v364_v16 = vld [vmem:[%s475_s2] sm:$0xff]   ;;  %v365_v43 = vld [vmem:[%s476_s3 + $0x8] sm:$0xff]  }
   0x5   :  { %v306_v34 = vld [vmem:[%s474_s4 + $0x3] ss:$0 sm:$0xff]  ;;  %v312_v53 = vld [vmem:[%s474_s4 + $0x4] ss:$0 sm:$0xff]  ;;  %v313_v57 = vld [vmem:[%s474_s4 + $0x5] ss:$0 sm:$0xff] }
   0x6   :  { %v366_v44 = vld [vmem:[%s476_s3] sm:$0xff]  }
   0x7   :  { %332 = vmatpush3.bf16.msra.mxu0 %v360_v2  ;;  %340 = vmatpush3.bf16.msra.mxu1 %v362_v14  ;;  %v314_v62 = vld [vmem:[%s474_s4 + $0x6] ss:$0 sm:$0xff] }
   0x8   :  { %349 = vmatprep.subr.bf16.mxu0 %v371_v0  ;;  %341 = vmatprep.subr.bf16.mxu1 %v371_v0 }
   0xa   :  { %334 = vmatmul.mubr.msk.bf16.vlgmr.msra.gmra.mxu0 %vm49_vm1, %v28_v3 }
   0xb   :  { %353 = vmatprep.mubr.msk.bf16.mxu0 %vm372_vm0, %v371_v0  ;;  %342 = vmatpush3.bf16.msra.mxu1 %v363_v15 }
   0xc   :  { %343 = vmatprep.subr.bf16.mxu1 %v371_v0  ;;  %350 = vmatpush3.bf16.msra.mxu0 %v365_v43 }
   0xd   :  { %351 = vmatprep.subr.bf16.mxu0 %v371_v0 }
   0xf   :  { %344 = vmatpush3.bf16.msra.mxu1 %v364_v16 }
  0x10   :  { %352 = vmatpush3.bf16.msra.mxu0 %v366_v44 }
  0xca   :  { %v87_v5 = vpop.f32.mrf.mxu0 }
  0xcb   :  { %v88_v6 = vadd.f32 %v300_v4, %v87_v5 }
  0xcc   :  { %v335_v7 = vpop.f32.mrf.mxu0 }
  0xcd   :  { %v94_v8 = vsel %vm93_vm2, %v88_v6, 0.0  ;;  %v99_v9 = vmul.f32 %v88_v6, %v88_v6 }
  0xce   :  { %95 = vadd.xlane.f32.xlu0 %v94_v8  ;;  %v90_v10 = vpop.f32.mrf.mxu0 }
  0xcf   :  { %v100_v12 = vsel %vm93_vm2, %v99_v9, 0.0 }
  0xd0   :  { %v336_v11 = vpop.f32.mrf.mxu0 }
  0xd2   :  { %101 = vadd.xlane.f32.xlu0 %v100_v12 }
 0x157   :  { %v96_v17 = vpop.xlane.xlu0 %95 }
 0x158   :  { %v98_v18 = vmul.f32 0.015625, %v96_v17 }
 0x15a   :  { %v104_v20 = vmul.f32 %v98_v18, %v98_v18  ;;  %v107_v27 = vsub.f32 %v88_v6, %v98_v18 }
 0x15b   :  { %v102_v19 = vpop.xlane.xlu0 %101 }
 0x15c   :  { %v103_v21 = vmul.f32 0.015625, %v102_v19 }
 0x15e   :  { %v105_v22 = vsub.f32 %v103_v21, %v104_v20 }
 0x160   :  { %v106_v23 = vmax.f32 %v105_v22, 0.0 }
 0x162   :  { %v108_v24 = vadd.f32 1e-05, %v106_v23 }
 0x164   :  { %367 = vrsqrt.f32 %v108_v24 }
 0x171   :  { %v368_v26 = vpop.eup %367 }
 0x172   :  { %v114_v28 = vmul.f32 %v368_v26, %v304_v25 }
 0x174   :  { %v115_v30 = vmul.f32 %v114_v28, %v107_v27 }
 0x176   :  { %v120_v31 = vadd.f32 %v305_v29, %v115_v30 }
 0x178   :  { %v121_v32 = vmax.f32 %v120_v31, 0.0 }
 0x17a   :  { %v122_v33 = vpack.c.bf16 %v121_v32, %v121_v32 }
 0x17c   :  { %346 = vmatmul.mubr.msk.bf16.vlgmr.msra.gmra.mxu1 %vm93_vm2, %v122_v33 }
 0x23c   :  { %v196_v35 = vpop.f32.mrf.mxu1 }
 0x23d   :  { %v197_v36 = vadd.f32 %v306_v34, %v196_v35 }
 0x23e   :  { %v347_v37 = vpop.f32.mrf.mxu1 }
 0x23f   :  { %v202_v38 = vsel %vm49_vm1, %v197_v36, 0.0  ;;  %v207_v39 = vmul.f32 %v197_v36, %v197_v36 }
 0x240   :  { %203 = vadd.xlane.f32.xlu1 %v202_v38  ;;  %v199_v40 = vpop.f32.mrf.mxu1 }
 0x241   :  { %v208_v42 = vsel %vm49_vm1, %v207_v39, 0.0 }
 0x242   :  { %v348_v41 = vpop.f32.mrf.mxu1 }
 0x244   :  { %209 = vadd.xlane.f32.xlu1 %v208_v42 }
 0x2c9   :  { %v204_v45 = vpop.xlane.xlu1 %203 }
 0x2ca   :  { %v206_v46 = vmul.f32 0.03125, %v204_v45 }
 0x2cc   :  { %v212_v48 = vmul.f32 %v206_v46, %v206_v46  ;;  %v215_v55 = vsub.f32 %v197_v36, %v206_v46 }
 0x2cd   :  { %v210_v47 = vpop.xlane.xlu1 %209 }
 0x2ce   :  { %v211_v49 = vmul.f32 0.03125, %v210_v47 }
 0x2d0   :  { %v213_v50 = vsub.f32 %v211_v49, %v212_v48 }
 0x2d2   :  { %v214_v51 = vmax.f32 %v213_v50, 0.0 }
 0x2d4   :  { %v216_v52 = vadd.f32 1e-05, %v214_v51 }
 0x2d6   :  { %369 = vrsqrt.f32 %v216_v52 }
 0x2e3   :  { %v370_v54 = vpop.eup %369 }
 0x2e4   :  { %v222_v56 = vmul.f32 %v370_v54, %v312_v53 }
 0x2e6   :  { %v223_v58 = vmul.f32 %v222_v56, %v215_v55 }
 0x2e8   :  { %v228_v59 = vadd.f32 %v313_v57, %v223_v58 }
 0x2ea   :  { %v229_v60 = vmax.f32 %v228_v59, 0.0 }
 0x2ec   :  { %v230_v61 = vpack.c.bf16 %v229_v60, %v229_v60 }
 0x2ee   :  { %354 = vmatmul.mubr.msk.bf16.vlgmr.msra.gmra.mxu0 %vm49_vm1, %v230_v61 }
 0x3ae   :  { %v288_v63 = vpop.f32.mrf.mxu0 }
 0x3af   :  { %v289_v0 = vadd.f32 %v314_v62, %v288_v63 }
 0x3b0   :  { %v355_v1 = vpop.f32.mrf.mxu0 }
 0x3b1   :  { %295 = vst.msk [vmem:[%s477_s5] sm:$0xff] %vm294_vm3, %v289_v0 }
 0x3b2   :  { %v291_v2 = vpop.f32.mrf.mxu0 }
 0x3b4   :  { %v356_v3 = vpop.f32.mrf.mxu0 }

</bundles_post_ra>
